<compile_context>
chip_gen: v6e
topology: v6e:2x2x1
jax: 0.10.0
libtpu: 0.0.40
codegen_flags: <defaults>
</compile_context>

<pallas_src>
import functools

import jax
import jax.numpy as jnp
from jax import lax
from jax.experimental import pallas as pl
from jax.experimental.pallas import tpu as pltpu

H1, H2 = 40, 60   # hidden sizes from the torch module
LANE = 128


def _round_up(x, m):
    return ((x + m - 1) // m) * m


def mlp_kernel(xt_ref, w1_ref, b1_ref, w2_ref, b2_ref, w3_ref, b3_ref, o_ref,
               *, chunk_b):
    """Transposed (feature-major) MLP tile.

    xt_ref : (n_in,  tile_b)   batch on the lane axis
    w*_ref : (out_f, in_f)     torch nn.Linear layout, VMEM resident
    b*_ref : (out_f, 1)        lane-broadcast bias
    o_ref  : (n_out, tile_b)
    """
    tile_b = xt_ref.shape[1]

    # Weights / biases are VMEM residents (constant index_map): read once.
    w1 = w1_ref[...]
    w2 = w2_ref[...]
    w3 = w3_ref[...]
    b1 = b1_ref[...]
    b2 = b2_ref[...]
    b3 = b3_ref[...]

    cdt = w1.dtype  # MXU input dtype (f32 or bf16); accumulation is always f32.

    n_chunks = tile_b // chunk_b

    def body(c, carry):
        col = pl.multiple_of(c * chunk_b, chunk_b)
        xc = xt_ref[:, pl.ds(col, chunk_b)]                       # (n_in, chunk)

        h1 = jnp.dot(w1, xc, preferred_element_type=jnp.float32) + b1
        h1 = jnp.maximum(h1, 0.0).astype(cdt)                     # (40, chunk)

        h2 = jnp.dot(w2, h1, preferred_element_type=jnp.float32) + b2
        h2 = jnp.maximum(h2, 0.0).astype(cdt)                     # (60, chunk)

        out = jnp.dot(w3, h2, preferred_element_type=jnp.float32) + b3
        # Lane-dense (chunk_b-wide) unmasked store.
        o_ref[:, pl.ds(col, chunk_b)] = out.astype(o_ref.dtype)
        return carry

    # Partial unroll: enough LLO lookahead without blowing the 64-vreg file
    # when tile_b/chunk_b is large.
    lax.fori_loop(0, n_chunks, body, 0, unroll=min(4, n_chunks))


def mlp_forward(x, params, *, tile_b=4096, chunk_b=256,
                compute_dtype=jnp.bfloat16):
    """x: (B, nInput) float32.  params: torch-layout w1,b1,w2,b2,w3,b3."""
    w1, w2, w3 = params["w1"], params["w2"], params["w3"]
    b1, b2, b3 = (params[k].reshape(-1, 1).astype(jnp.float32)
                  for k in ("b1", "b2", "b3"))
    B, n_in = x.shape
    n_out = w3.shape[0]

    # Column chunk: multiple of 128 lanes, no bigger than the padded batch.
    chunk_b = max(LANE, min(_round_up(chunk_b, LANE), _round_up(B, LANE)))
    # Tile: multiple of chunk; capped at ceil(B/2) (rounded to a chunk) so the
    # grid has >=2 steps for realistic B -> both v7x TensorCores get work.
    half_b = _round_up(-(-B // 2), chunk_b)
    tile_b = max(chunk_b, min(_round_up(tile_b, chunk_b), half_b))
    b_pad = _round_up(B, tile_b)

    # Feature-major layout (pure layout plumbing; one cheap HBM pass).
    xt = x.T
    if b_pad != B:
        xt = jnp.pad(xt, ((0, 0), (0, b_pad - B)))

    # bf16 MXU inputs by default (cuts MXU push passes ~3x on v6e/v7x and
    # halves the x stream); biases / accumulation / output stay f32.
    xt = xt.astype(compute_dtype)
    w1c = w1.astype(compute_dtype)
    w2c = w2.astype(compute_dtype)
    w3c = w3.astype(compute_dtype)

    grid = (b_pad // tile_b,)

    def const_spec(shape):
        # Constant block index -> fetched once, VMEM-resident across the grid.
        return pl.BlockSpec(shape, lambda i: (0, 0))

    out_t = pl.pallas_call(
        functools.partial(mlp_kernel, chunk_b=chunk_b),
        out_shape=jax.ShapeDtypeStruct((n_out, b_pad), jnp.float32),
        grid=grid,
        in_specs=[
            pl.BlockSpec((n_in, tile_b), lambda i: (0, i)),   # xT tiled on batch
            const_spec(w1c.shape), const_spec(b1.shape),
            const_spec(w2c.shape), const_spec(b2.shape),
            const_spec(w3c.shape), const_spec(b3.shape),
        ],
        out_specs=pl.BlockSpec((n_out, tile_b), lambda i: (0, i)),
        compiler_params=pltpu.CompilerParams(
            # Batch tiles are independent -> shard across TCs on v7x megacore.
            dimension_semantics=("parallel",),
            # Lane-dense layout keeps VMEM/step < ~1 MiB even at tile_b=4096,
            # so the default scoped VMEM limit is fine on v5e/v6e/v7x.
        ),
    )(xt, w1c, b1, w2c, b2, w3c, b3)

    return out_t[:, :B].T


def init_params(key, n_input, n_output):
    """Deterministic init mimicking nn.Linear: W (out,in), b (out,), U(+-1/sqrt(fan_in))."""
    dims = [(n_input, H1), (H1, H2), (H2, n_output)]
    params = {}
    for i, (fan_in, fan_out) in enumerate(dims, start=1):
        key, kw, kb = jax.random.split(key, 3)
        bound = 1.0 / jnp.sqrt(fan_in)
        params[f"w{i}"] = jax.random.uniform(
            kw, (fan_out, fan_in), jnp.float32, -bound, bound)
        params[f"b{i}"] = jax.random.uniform(
            kb, (fan_out,), jnp.float32, -bound, bound)
    return params


def mlp_reference(x, p):
    h1 = jnp.maximum(x @ p["w1"].T + p["b1"], 0.0)
    h2 = jnp.maximum(h1 @ p["w2"].T + p["b2"], 0.0)
    return h2 @ p["w3"].T + p["b3"]


if __name__ == "__main__":
    key = jax.random.PRNGKey(0)
    n_input, n_output = 16, 10

    # Small primary test (exact f32 path).
    batch = 8
    key, kx = jax.random.split(key)
    x = jax.random.normal(kx, (batch, n_input), jnp.float32)
    params = init_params(key, n_input, n_output)

    out = jax.block_until_ready(
        mlp_forward(x, params, compute_dtype=jnp.float32))
    ref = mlp_reference(x, params)
    assert out.shape == (batch, n_output)
    assert jnp.allclose(out, ref, atol=1e-5, rtol=1e-5)

    # Tail / multi-tile test: B not a multiple of the chunk, 2-step grid.
    batch2 = 300
    key, kx2 = jax.random.split(key)
    x2 = jax.random.normal(kx2, (batch2, n_input), jnp.float32)
    out2 = jax.block_until_ready(
        mlp_forward(x2, params, compute_dtype=jnp.float32))
    ref2 = mlp_reference(x2, params)
    assert out2.shape == (batch2, n_output)
    assert jnp.allclose(out2, ref2, atol=1e-5, rtol=1e-5)

    # Default bf16 MXU-input path (f32 accumulation): looser tolerance expected.
    out_bf16 = jax.block_until_ready(mlp_forward(x2, params))
    assert out_bf16.shape == (batch2, n_output)
    assert jnp.allclose(out_bf16, ref2, atol=5e-2, rtol=5e-2)

    print("KERNEL_OK")
</pallas_src>

<mosaic_0001>
module attributes {stable_mosaic.version = 11 : i64} {
  func.func @mlp_kernel(%arg0: i32, %arg1: memref<16x128xf32, #tpu.memory_space<vmem>>, %arg2: memref<40x16xf32, #tpu.memory_space<vmem>>, %arg3: memref<40x1xf32, #tpu.memory_space<vmem>>, %arg4: memref<60x40xf32, #tpu.memory_space<vmem>>, %arg5: memref<60x1xf32, #tpu.memory_space<vmem>>, %arg6: memref<10x60xf32, #tpu.memory_space<vmem>>, %arg7: memref<10x1xf32, #tpu.memory_space<vmem>>, %arg8: memref<10x128xf32, #tpu.memory_space<vmem>>) attributes {dimension_semantics = [#tpu.dimension_semantics<parallel>], iteration_bounds = array<i64: 1>, scalar_prefetch = 0 : i64, scratch_operands = 0 : i64, tpu.core_type = #tpu.core_type<tc>, window_params = [{transform_indices = @transform_0, window_bounds = array<i64: 16, 128>}, {pipeline_mode = #tpu.pipeline_mode<synchronous>, transform_indices = @transform_1, window_bounds = array<i64: 40, 16>}, {pipeline_mode = #tpu.pipeline_mode<synchronous>, transform_indices = @transform_2, window_bounds = array<i64: 40, 1>}, {pipeline_mode = #tpu.pipeline_mode<synchronous>, transform_indices = @transform_3, window_bounds = array<i64: 60, 40>}, {pipeline_mode = #tpu.pipeline_mode<synchronous>, transform_indices = @transform_4, window_bounds = array<i64: 60, 1>}, {pipeline_mode = #tpu.pipeline_mode<synchronous>, transform_indices = @transform_5, window_bounds = array<i64: 10, 60>}, {pipeline_mode = #tpu.pipeline_mode<synchronous>, transform_indices = @transform_6, window_bounds = array<i64: 10, 1>}, {transform_indices = @transform_7, window_bounds = array<i64: 10, 128>}]} {
    %c0 = arith.constant 0 : index
    %c0_0 = arith.constant 0 : index
    %0 = vector.load %arg2[%c0, %c0_0] : memref<40x16xf32, #tpu.memory_space<vmem>>, vector<40x16xf32>
    %c0_1 = arith.constant 0 : index
    %c0_2 = arith.constant 0 : index
    %1 = vector.load %arg4[%c0_1, %c0_2] : memref<60x40xf32, #tpu.memory_space<vmem>>, vector<60x40xf32>
    %c0_3 = arith.constant 0 : index
    %c0_4 = arith.constant 0 : index
    %2 = vector.load %arg6[%c0_3, %c0_4] : memref<10x60xf32, #tpu.memory_space<vmem>>, vector<10x60xf32>
    %c0_5 = arith.constant 0 : index
    %c0_6 = arith.constant 0 : index
    %3 = vector.load %arg3[%c0_5, %c0_6] : memref<40x1xf32, #tpu.memory_space<vmem>>, vector<40x1xf32>
    %c0_7 = arith.constant 0 : index
    %c0_8 = arith.constant 0 : index
    %4 = vector.load %arg5[%c0_7, %c0_8] : memref<60x1xf32, #tpu.memory_space<vmem>>, vector<60x1xf32>
    %c0_9 = arith.constant 0 : index
    %c0_10 = arith.constant 0 : index
    %5 = vector.load %arg7[%c0_9, %c0_10] : memref<10x1xf32, #tpu.memory_space<vmem>>, vector<10x1xf32>
    %c0_i32 = arith.constant 0 : i32
    %c128_i32 = arith.constant 128 : i32
    %6 = arith.muli %c0_i32, %c128_i32 : i32
    %7 = tpu.assume_multiple %6, 128 : i32
    %c0_11 = arith.constant 0 : index
    %8 = arith.index_cast %7 : i32 to index
    %9 = vector.load %arg1[%c0_11, %8] : memref<16x128xf32, #tpu.memory_space<vmem>>, vector<16x128xf32>
    %cst = arith.constant dense<0.000000e+00> : vector<40x128xf32>
    %10 = tpu.matmul %0, %9, %cst {dimension_numbers = #tpu.dot_dimension_numbers<[1], [0], [0], [1], [0, 0, 1, 1], [], []>} : vector<40x16xf32>, vector<16x128xf32>, vector<40x128xf32> -> vector<40x128xf32>
    %11 = vector.broadcast %3 : vector<40x1xf32> to vector<40x128xf32>
    %12 = arith.addf %10, %11 : vector<40x128xf32>
    %cst_12 = arith.constant 0.000000e+00 : f32
    %13 = vector.broadcast %cst_12 : f32 to vector<40x128xf32>
    %14 = arith.maximumf %12, %13 : vector<40x128xf32>
    %cst_13 = arith.constant dense<0.000000e+00> : vector<60x128xf32>
    %15 = tpu.matmul %1, %14, %cst_13 {dimension_numbers = #tpu.dot_dimension_numbers<[1], [0], [0], [1], [0, 0, 1, 1], [], []>} : vector<60x40xf32>, vector<40x128xf32>, vector<60x128xf32> -> vector<60x128xf32>
    %16 = vector.broadcast %4 : vector<60x1xf32> to vector<60x128xf32>
    %17 = arith.addf %15, %16 : vector<60x128xf32>
    %cst_14 = arith.constant 0.000000e+00 : f32
    %18 = vector.broadcast %cst_14 : f32 to vector<60x128xf32>
    %19 = arith.maximumf %17, %18 : vector<60x128xf32>
    %cst_15 = arith.constant dense<0.000000e+00> : vector<10x128xf32>
    %20 = tpu.matmul %2, %19, %cst_15 {dimension_numbers = #tpu.dot_dimension_numbers<[1], [0], [0], [1], [0, 0, 1, 1], [], []>} : vector<10x60xf32>, vector<60x128xf32>, vector<10x128xf32> -> vector<10x128xf32>
    %21 = vector.broadcast %5 : vector<10x1xf32> to vector<10x128xf32>
    %22 = arith.addf %20, %21 : vector<10x128xf32>
    %c0_16 = arith.constant 0 : index
    %23 = arith.index_cast %7 : i32 to index
    %24 = vector.load %arg8[%c0_16, %23] : memref<10x128xf32, #tpu.memory_space<vmem>>, vector<10x128xf32>
    tpu.vector_store %arg8[%c0_16, %23], %22 {strides = array<i32>} : memref<10x128xf32, #tpu.memory_space<vmem>>, vector<10x128xf32>,
    %c1_i32 = arith.constant 1 : i32
    return
  }
  func.func @transform_0(%arg0: i32) -> (i32, i32) {
    %c0_i32 = arith.constant 0 : i32
    %c0_i32_0 = arith.constant 0 : i32
    return %c0_i32, %arg0 : i32, i32
  }
  func.func @transform_1(%arg0: i32) -> (i32, i32) {
    %c0_i32 = arith.constant 0 : i32
    %c0_i32_0 = arith.constant 0 : i32
    %c0_i32_1 = arith.constant 0 : i32
    return %c0_i32, %c0_i32_0 : i32, i32
  }
  func.func @transform_2(%arg0: i32) -> (i32, i32) {
    %c0_i32 = arith.constant 0 : i32
    %c0_i32_0 = arith.constant 0 : i32
    %c0_i32_1 = arith.constant 0 : i32
    return %c0_i32, %c0_i32_0 : i32, i32
  }
  func.func @transform_3(%arg0: i32) -> (i32, i32) {
    %c0_i32 = arith.constant 0 : i32
    %c0_i32_0 = arith.constant 0 : i32
    %c0_i32_1 = arith.constant 0 : i32
    return %c0_i32, %c0_i32_0 : i32, i32
  }
  func.func @transform_4(%arg0: i32) -> (i32, i32) {
    %c0_i32 = arith.constant 0 : i32
    %c0_i32_0 = arith.constant 0 : i32
    %c0_i32_1 = arith.constant 0 : i32
    return %c0_i32, %c0_i32_0 : i32, i32
  }
  func.func @transform_5(%arg0: i32) -> (i32, i32) {
    %c0_i32 = arith.constant 0 : i32
    %c0_i32_0 = arith.constant 0 : i32
    %c0_i32_1 = arith.constant 0 : i32
    return %c0_i32, %c0_i32_0 : i32, i32
  }
  func.func @transform_6(%arg0: i32) -> (i32, i32) {
    %c0_i32 = arith.constant 0 : i32
    %c0_i32_0 = arith.constant 0 : i32
    %c0_i32_1 = arith.constant 0 : i32
    return %c0_i32, %c0_i32_0 : i32, i32
  }
  func.func @transform_7(%arg0: i32) -> (i32, i32) {
    %c0_i32 = arith.constant 0 : i32
    %c0_i32_0 = arith.constant 0 : i32
    return %c0_i32, %arg0 : i32, i32
  }
}

</mosaic_0001>

<bundles_post_ra>
// kernel: tpu_custom_call.1
= control target key start
LH: loop header
LB: loop body
LE: loop exit
PB: predicated region body
PF: predicated region fallthrough
CT: control target
= control target key end

     0   :  { %v623_v1 = vmov 0.0   ;;  %vm624_vm0 = vmmov 0   ;;  %vm84_vm1 = vcmask 130048   ;;  %v625_v4 = vmov 0   ;;  %s788_s0 = inlined_call_operand.vmem [shape: f32[16,128], index: 0, kind: input, shape index: {}]   ;;  %s789_s1 = inlined_call_operand.vmem [shape: f32[40,16], index: 1, kind: input, shape index: {}]   ;;  %s790_s2 = inlined_call_operand.vmem [shape: f32[40,1], index: 2, kind: input, shape index: {}]   ;;  %s791_s3 = inlined_call_operand.vmem [shape: f32[60,40], index: 3, kind: input, shape index: {}]   ;;  %s792_s4 = inlined_call_operand.vmem [shape: f32[60,1], index: 4, kind: input, shape index: {}]   ;;  %s793_s5 = inlined_call_operand.vmem [shape: f32[10,60], index: 5, kind: input, shape index: {}]   ;;  %s794_s6 = inlined_call_operand.vmem [shape: f32[10,1], index: 6, kind: input, shape index: {}]   ;;  %s795_s7 = inlined_call_operand.hbm [shape: f32[10,128], index: 7, kind: output, shape index: {}]  }
   0x1   :  { %v58_v0 = vld [vmem:[%s788_s0 + $0x8] sm:$0xff]  ;;  %533 = vmatprep.subr.mxu0 %v623_v1  ;;  %v57_v2 = vld [vmem:[%s788_s0] sm:$0xff]  ;;  %537 = vmatprep.mubr.msk.f32.mxu0 %vm624_vm0, %v623_v1  ;;  %v44_v6 = vld [vmem:[%s790_s2 + $0x10] sm:$0xff] }
   0x2   :  { %534 = vmatpush3.msra.mxu0 %v58_v0  ;;  %v27_v3 = vld [vmem:[%s789_s1] sm:$0xff]  ;;  %599 = vset.pattern.permute.xlu0 %v625_v4  ;;  %v45_v7 = vld [vmem:[%s790_s2 + $0x18] sm:$0xff]  ;;  %v28_v8 = vld [vmem:[%s789_s1 + $0x8] sm:$0xff] }
   0x3   :  { %v46_v5 = vld [vmem:[%s790_s2 + $0x20] sm:$0xff]  ;;  %535 = vmatprep.subr.mxu0 %v623_v1  ;;  %600 = vset.pattern.permute.xlu1 %v625_v4  ;;  %v43_v9 = vld [vmem:[%s790_s2 + $0x8] sm:$0xff] }
   0x4   :  { %81 = vperm.xlu0 %599, %v46_v5   ;;  %536 = vmatpush3.msra.mxu0 %v57_v2 }
   0x5   :  { %538 = vmatmul.mubr.msk.f32.vlgmr.msra.gmra.mxu0 %vm84_vm1, %v27_v3  ;;  %71 = vperm.xlu1 %600, %v44_v6  }
   0x6   :  { %540 = vmatprep.mubr.msk.f32.mxu0 %vm624_vm0, %v623_v1 }
   0x8   :  { %76 = vperm.xlu0 %599, %v45_v7  }
   0x9   :  { %12 = vsyncpa [#allocation3], 0  ;;  %v42_v10 = vld [vmem:[%s790_s2] sm:$0xff]  ;;  %541 = vmatmul.mubr.msk.f32.gmra.mxu0 %vm84_vm1, %v28_v8  ;;  %66 = vperm.xlu1 %600, %v43_v9   ;;  %v29_v11 = vld [vmem:[%s789_s1 + $0x10] sm:$0xff]  ;;  %vm235_vm2 = vcmask 326656   ;;  %vm383_vm3 = vcmask 490496  }
   0xa   :  { %543 = vmatprep.mubr.msk.f32.mxu0 %vm624_vm0, %v623_v1  ;;  %v54_v12 = vld [vmem:[%s792_s4 + $0x38] sm:$0xf]  ;;  %v53_v13 = vld [vmem:[%s792_s4 + $0x30] sm:$0xff]  ;;  %v52_v15 = vld [vmem:[%s792_s4 + $0x28] sm:$0xff]  ;;  %vm390_vm4 = vcmask 1043456   ;;  %s626_s0 = smov [#allocation2]  }
   0xb   :  { %v30_v14 = vld [vmem:[%s789_s1 + $0x18] sm:$0xff]  ;;  %v51_v16 = vld [vmem:[%s792_s4 + $0x20] sm:$0xff]  ;;  %v49_v19 = vld [vmem:[%s792_s4 + $0x10] sm:$0xff]  ;;  %s476_s11 = sshll.u32 %s626_s0, 4  ;;  %s477_s11 = int_to_ptr.vmem [resolvable:$true] %s476_s11 }
   0xc   :  { %61 = vperm.xlu0 %599, %v42_v10   ;;  %v31_v17 = vld [vmem:[%s789_s1 + $0x20] sm:$0xff]  ;;  %v50_v18 = vld [vmem:[%s792_s4 + $0x18] sm:$0xff]  ;;  %v48_v20 = vld [vmem:[%s792_s4 + $0x8] sm:$0xff]  ;;  %s601_s12 = scalar_lea.vmem %s477_s11, 256  ;;  %p606_p1 = scmp.lt.s32.totalorder %s477_s11, %s477_s11 }
   0xd   :  { %544 = vmatmul.mubr.msk.f32.gmra.mxu0 %vm84_vm1, %v29_v11  ;;  %232 = vperm.xlu1 %600, %v54_v12   ;;  %v47_v21 = vld [vmem:[%s792_s4] sm:$0xff]  ;;  %v56_v23 = vld [vmem:[%s794_s6 + $0x8] sm:$0x3]  ;;  %v34_v51 = vld [vmem:[%s791_s3 + $0x10] sm:$0xff]  ;;  %p602_p0 = scmp.ne.s32.totalorder %s477_s11, %s601_s12  ;;  %p607_p2 = scmp.lt.s32.totalorder %s601_s12, %s601_s12 }
   0xe   :  { %546 = vmatprep.mubr.msk.f32.mxu0 %vm624_vm0, %v623_v1  ;;  %v55_v22 = vld [vmem:[%s794_s6] sm:$0xff]  ;;  %v33_v50 = vld [vmem:[%s791_s3 + $0x8] sm:$0xff]  ;;  %v35_v52 = vld [vmem:[%s791_s3 + $0x18] sm:$0xff] }
   0xf   :  { %v32_v24 = vld [vmem:[%s791_s3] sm:$0xff]  ;;  %v37_v54 = vld [vmem:[%s791_s3 + $0x28] sm:$0xff]  ;;  %v38_v55 = vld [vmem:[%s791_s3 + $0x30] sm:$0xff]  ;;  %p608_p3 = por %p607_p2, %p606_p1 }
  0x10   :  { %227 = vperm.xlu0 %599, %v53_v13   ;;  %562 = vmatprep.mubr.msk.f32.mxu1 %vm235_vm2, %v32_v24  ;;  %v36_v53 = vld [vmem:[%s791_s3 + $0x20] sm:$0xff]  ;;  %v39_v56 = vld [vmem:[%s791_s3 + $0x38] sm:$0xf] }
  0x11   :  { %547 = vmatmul.mubr.msk.f32.gmra.mxu0 %vm84_vm1, %v30_v14  ;;  %222 = vperm.xlu1 %600, %v52_v15   ;;  %v40_v57 = vld [vmem:[%s793_s5] sm:$0xff]  ;;  %p609_p4 = pnand %p608_p3, %p602_p0 }
  0x12   :  { %549 = vmatprep.mubr.msk.f32.mxu0 %vm624_vm0, %v623_v1 }
  0x14   :  { %217 = vperm.xlu0 %599, %v51_v16  }
  0x15   :  { %550 = vmatmul.mubr.msk.f32.gmra.mxu0 %vm84_vm1, %v31_v17  ;;  %212 = vperm.xlu1 %600, %v50_v18  }
  0x16   :  { %590 = vmatprep.mubr.msk.f32.mxu0 %vm383_vm3, %v40_v57 }
  0x18   :  { %207 = vperm.xlu0 %599, %v49_v19  }
  0x19   :  { %202 = vperm.xlu1 %600, %v48_v20  }
  0x1c   :  { %197 = vperm.xlu0 %599, %v47_v21  }
  0x1d   :  { %375 = vperm.xlu1 %600, %v55_v22  }
  0x20   :  { %380 = vperm.xlu0 %599, %v56_v23  }
  0x7f   :  { %v82_v30 = vpop.permute.xlu0 %81 }
  0x80   :  { %v72_v33 = vpop.permute.xlu1 %71 }
  0x83   :  { %v77_v35 = vpop.permute.xlu0 %76 }
  0x84   :  { %v67_v42 = vpop.permute.xlu1 %66 }
  0x87   :  { %v62_v45 = vpop.permute.xlu0 %61 }
  0x88   :  { %v233_v60 = vpop.permute.xlu1 %232 }
  0x8b   :  { %v228_v62 = vpop.permute.xlu0 %227 }
  0x8c   :  { %v223_v1 = vpop.permute.xlu1 %222 }
  0x8f   :  { %v218_v3 = vpop.permute.xlu0 %217 }
  0x90   :  { %v213_v10 = vpop.permute.xlu1 %212 }
  0x93   :  { %v208_v13 = vpop.permute.xlu0 %207 }
  0x94   :  { %v203_v18 = vpop.permute.xlu1 %202 }
  0x97   :  { %v198_v21 = vpop.permute.xlu0 %197 }
  0xc5   :  { %v166_v25 = vpop.f32.mrf.mxu0 }
  0xc6   :  { %v167_v46 = vadd.f32 %v166_v25, %v62_v45 }
  0xc7   :  { %v539_v26 = vpop.f32.mrf.mxu0 }
  0xc8   :  { %v190_v49 = vmax.f32 %v167_v46, 0.0  ;;  %v41_v26 = vld [vmem:[%s793_s5 + $0x8] sm:$0x3] }
  0xc9   :  { %v171_v27 = vpop.f32.mrf.mxu0 }
  0xca   :  { %v172_v43 = vadd.f32 %v171_v27, %v67_v42  ;;  %v381_v27 = vpop.permute.xlu0 %380 }
  0xcb   :  { %v542_v28 = vpop.f32.mrf.mxu0 }
  0xcc   :  { %v191_v48 = vmax.f32 %v172_v43, 0.0 }
  0xcd   :  { %v176_v29 = vpop.f32.mrf.mxu0 }
  0xce   :  { %v177_v40 = vadd.f32 %v176_v29, %v72_v33 }
  0xcf   :  { %v545_v31 = vpop.f32.mrf.mxu0 }
  0xd0   :  { %v192_v47 = vmax.f32 %v177_v40, 0.0 }
  0xd1   :  { %v181_v32 = vpop.f32.mrf.mxu0 }
  0xd2   :  { %v182_v37 = vadd.f32 %v181_v32, %v77_v35 }
  0xd3   :  { %v548_v34 = vpop.f32.mrf.mxu0 }
  0xd4   :  { %v193_v44 = vmax.f32 %v182_v37, 0.0 }
  0xd5   :  { %v186_v36 = vpop.f32.mrf.mxu0 }
  0xd6   :  { %v187_v38 = vadd.f32 %v186_v36, %v82_v30  ;;  %v376_v30 = vpop.permute.xlu1 %375 }
  0xd7   :  { %v551_v39 = vpop.f32.mrf.mxu0 }
  0xd8   :  { %v194_v41 = vmax.f32 %v187_v38, 0.0 }
  0xda   :  { %552 = vmatprep.subr.mxu1 %v194_v41 }
  0xdb   :  { %553 = vmatpush3.msra.mxu1 %v194_v41 }
  0xdc   :  { %554 = vmatprep.subr.mxu1 %v193_v44 }
  0xdd   :  { %555 = vmatpush3.msra.mxu1 %v193_v44 }
  0xde   :  { %556 = vmatprep.subr.mxu1 %v192_v47 }
  0xdf   :  { %557 = vmatpush3.msra.mxu1 %v192_v47 }
  0xe0   :  { %558 = vmatprep.subr.mxu1 %v191_v48 }
  0xe1   :  { %559 = vmatpush3.msra.mxu1 %v191_v48 }
  0xe2   :  { %560 = vmatprep.subr.mxu1 %v190_v49 }
  0xe3   :  { %561 = vmatpush3.msra.mxu1 %v190_v49 }
  0xe4   :  { %563 = vmatmul.mubr.msk.f32.vlgmr.msra.gmra.mxu1 %vm235_vm2, %v33_v50 }
  0xe5   :  { %565 = vmatprep.mubr.msk.f32.mxu1 %vm235_vm2, %v34_v51 }
  0xe8   :  { %566 = vmatmul.mubr.msk.f32.gmra.mxu1 %vm235_vm2, %v35_v52 }
  0xe9   :  { %568 = vmatprep.mubr.msk.f32.mxu1 %vm235_vm2, %v36_v53 }
  0xec   :  { %569 = vmatmul.mubr.msk.f32.gmra.mxu1 %vm235_vm2, %v37_v54 }
  0xed   :  { %571 = vmatprep.mubr.msk.f32.mxu1 %vm235_vm2, %v38_v55 }
  0xf0   :  { %572 = vmatmul.mubr.msk.f32.gmra.mxu1 %vm235_vm2, %v39_v56 }
 0x1a4   :  { %v564_v58 = vpop.f32.mrf.mxu1 }
 0x1a5   :  { %v332_v19 = vadd.f32 %v564_v58, %v203_v18 }
 0x1a6   :  { %v326_v59 = vpop.f32.mrf.mxu1 }
 0x1a7   :  { %v327_v22 = vadd.f32 %v326_v59, %v198_v21  ;;  %v366_v24 = vmax.f32 %v332_v19, 0.0 }
 0x1a8   :  { %v567_v61 = vpop.f32.mrf.mxu1 }
 0x1a9   :  { %v342_v14 = vadd.f32 %v567_v61, %v213_v10  ;;  %v365_v25 = vmax.f32 %v327_v22, 0.0 }
 0x1aa   :  { %v336_v63 = vpop.f32.mrf.mxu1 }
 0x1ab   :  { %v337_v16 = vadd.f32 %v336_v63, %v208_v13  ;;  %v368_v20 = vmax.f32 %v342_v14, 0.0 }
 0x1ac   :  { %v570_v0 = vpop.f32.mrf.mxu1 }
 0x1ad   :  { %v352_v7 = vadd.f32 %v570_v0, %v223_v1  ;;  %v367_v23 = vmax.f32 %v337_v16, 0.0 }
 0x1ae   :  { %v346_v2 = vpop.f32.mrf.mxu1 }
 0x1af   :  { %v347_v11 = vadd.f32 %v346_v2, %v218_v3  ;;  %v370_v15 = vmax.f32 %v352_v7, 0.0 }
 0x1b0   :  { %v573_v4 = vpop.f32.mrf.mxu1 }
 0x1b1   :  { %v362_v5 = vadd.f32 %v573_v4, %v233_v60  ;;  %v369_v17 = vmax.f32 %v347_v11, 0.0 }
 0x1b2   :  { %v356_v6 = vpop.f32.mrf.mxu1 }
 0x1b3   :  { %v372_v8 = vmax.f32 %v362_v5, 0.0  ;;  %v357_v9 = vadd.f32 %v356_v6, %v228_v62 }
 0x1b5   :  { %v371_v12 = vmax.f32 %v357_v9, 0.0  ;;  %574 = vmatprep.subr.msk.mxu0 %vm390_vm4, %v372_v8 }
 0x1b6   :  { %575 = vmatpush3.msk.msra.mxu0 %vm390_vm4, %v372_v8 }
 0x1b7   :  { %576 = vmatprep.subr.mxu0 %v371_v12 }
 0x1b8   :  { %577 = vmatpush3.msra.mxu0 %v371_v12 }
 0x1b9   :  { %578 = vmatprep.subr.mxu0 %v370_v15 }
 0x1ba   :  { %579 = vmatpush3.msra.mxu0 %v370_v15 }
 0x1bb   :  { %580 = vmatprep.subr.mxu0 %v369_v17 }
 0x1bc   :  { %581 = vmatpush3.msra.mxu0 %v369_v17 }
 0x1bd   :  { %582 = vmatprep.subr.mxu0 %v368_v20 }
 0x1be   :  { %583 = vmatpush3.msra.mxu0 %v368_v20 }
 0x1bf   :  { %584 = vmatprep.subr.mxu0 %v367_v23 }
 0x1c0   :  { %585 = vmatpush3.msra.mxu0 %v367_v23 }
 0x1c1   :  { %586 = vmatprep.subr.mxu0 %v366_v24 }
 0x1c2   :  { %587 = vmatpush3.msra.mxu0 %v366_v24 }
 0x1c3   :  { %588 = vmatprep.subr.mxu0 %v365_v25 }
 0x1c4   :  { %589 = vmatpush3.msra.mxu0 %v365_v25 }
 0x1c5   :  { %591 = vmatmul.mubr.msk.f32.vlgmr.msra.gmra.mxu0 %vm383_vm3, %v41_v26 }
 0x285   :  { %v592_v28 = vpop.f32.mrf.mxu0 }
 0x286   :  { %v466_v29 = vadd.f32 %v592_v28, %v381_v27 }
 0x287   :  { %v460_v31 = vpop.f32.mrf.mxu0 }
 0x288   :  { %470 = vst [vmem:[#allocation2 + $0x8] sm:$0x3] %v466_v29  ;;  %v461_v32 = vadd.f32 %v460_v31, %v376_v30 }
 0x28a   :  { %469 = vst [vmem:[#allocation2] sm:$0xff] %v461_v32 }
 0x28b   :  { %612 = shalt.err (!%p609_p4)
}
 0x28c   :  { %s627_s5 = smov 128   ;;  %s628_s13 = smov 8  }
 0x28d   :  { %482 = dma.vmem_to_hbm [thread:$0]  %s477_s11, 256, %s795_s7, [#allocation3], %s627_s5, %s627_s5, %s628_s13  }
 0x28e   :  { %621 = dma.done.wait [#allocation3], 256  }
 0x28f   :  { %622 = vsyncadd [#allocation3], 4294967040 }
 0x290   :  { %486 = vsyncpa [#allocation3], 1 }

</bundles_post_ra>
